<compile_context>
chip_gen: v7x
topology: tpu7x:2x2x1
jax: 0.10.0
libtpu: 0.0.40
codegen_flags: <defaults>
</compile_context>

<pallas_src>
import jax
import jax.numpy as jnp
from jax.experimental import pallas as pl
from jax.experimental.pallas import tpu as pltpu

_LANES = 128                       # lane-dense last dim (full vreg width)
_TARGET_BLOCK_BYTES = 2 * 1024 * 1024   # ~2 MiB per block; 2(in)+2(out) bufs = 8 MiB


def _identity_kernel(x_ref, o_ref):
    # Hot path: straight VMEM tile copy (identity).
    o_ref[...] = x_ref[...]


def _choose_tile_rows(rows: int, itemsize: int) -> int:
    """Pick a row tile ~2 MiB, multiple of 8 sublanes, capped at the array."""
    t = _TARGET_BLOCK_BYTES // (_LANES * itemsize)
    t = max(8, (t // 8) * 8)
    return rows if t >= rows else t


def _lane_dense_copy(x2: jax.Array) -> jax.Array:
    """Tiled identity copy of a (rows, 128) lane-dense array."""
    rows, lanes = x2.shape
    tile_rows = _choose_tile_rows(rows, x2.dtype.itemsize)
    grid = (pl.cdiv(rows, tile_rows),)

    return pl.pallas_call(
        _identity_kernel,
        out_shape=jax.ShapeDtypeStruct((rows, lanes), x2.dtype),
        grid_spec=pltpu.PrefetchScalarGridSpec(
            num_scalar_prefetch=0,
            grid=grid,
            in_specs=[pl.BlockSpec((tile_rows, lanes), lambda i: (i, 0))],
            out_specs=pl.BlockSpec((tile_rows, lanes), lambda i: (i, 0)),
        ),
        compiler_params=pltpu.CompilerParams(
            # Copy tiles are independent -> parallel lets v7x shard across
            # both TensorCores; harmless on single-TC v5e/v6e.
            dimension_semantics=("parallel",),
        ),
        cost_estimate=pl.CostEstimate(
            flops=0,
            transcendentals=0,
            bytes_accessed=2 * x2.size * x2.dtype.itemsize,
        ),
        # Output HBM buffer aliases the input buffer: no extra allocation /
        # second HBM stream.  (Values written are identical to the input, so
        # this is safe whether or not the caller donates the buffer.)
        input_output_aliases={0: 0},
    )(x2)


@jax.jit
def identity(x: jax.Array) -> jax.Array:
    """Pallas identity: returns a tensor equal to x (same shape/dtype)."""
    orig_shape = x.shape
    n = x.size
    if n == 0:
        return x  # nothing to copy

    # Glue: flatten and pad to a multiple of 128 so the kernel's output is
    # lane-dense (unmasked stores).  Padding only triggers for sizes not
    # divisible by 128 (e.g. the tiny demo input).
    flat = x.reshape(-1)
    rows = pl.cdiv(n, _LANES)
    padded = rows * _LANES
    if padded != n:
        flat = jnp.pad(flat, (0, padded - n))
    x2 = flat.reshape(rows, _LANES)

    out2 = _lane_dense_copy(x2)

    out_flat = out2.reshape(-1)
    if padded != n:
        out_flat = out_flat[:n]
    return out_flat.reshape(orig_shape)


class Identity:
    """JAX/Pallas mirror of the PyTorch Identity module."""

    def __init__(self, d: int):
        self.in_features = d
        self.out_features = d
        # No parameters to initialize (identity layer).

    def __call__(self, x: jax.Array) -> jax.Array:
        return identity(x)


if __name__ == "__main__":
    key = jax.random.PRNGKey(0)

    # Small shape consistent with the module: (batch=2, d=32).
    d = 32
    batch = 2
    x = jax.random.normal(key, (batch, d), dtype=jnp.float32)

    layer = Identity(d)
    y = layer(x)
    jax.block_until_ready(y)
    assert y.shape == x.shape and y.dtype == x.dtype
    assert bool(jnp.array_equal(y, x))

    # Secondary sanity check: lane-divisible shape (exercises the no-pad path).
    x_big = jax.random.normal(jax.random.PRNGKey(1), (16, 256), dtype=jnp.float32)
    y_big = identity(x_big)
    jax.block_until_ready(y_big)
    assert bool(jnp.array_equal(y_big, x_big))

    print("KERNEL_OK")
</pallas_src>

<mosaic_0001>
module attributes {stable_mosaic.version = 11 : i64} {
  func.func @_identity_kernel(%arg0: i32, %arg1: memref<1x128xf32, #tpu.memory_space<vmem>>, %arg2: memref<1x128xf32, #tpu.memory_space<vmem>>) attributes {dimension_semantics = [#tpu.dimension_semantics<parallel>], iteration_bounds = array<i64: 1>, scalar_prefetch = 0 : i64, scratch_operands = 0 : i64, tpu.core_type = #tpu.core_type<tc>, window_params = [{transform_indices = @transform_0, window_bounds = array<i64: 1, 128>}, {transform_indices = @transform_1, window_bounds = array<i64: 1, 128>}]} {
    %c0 = arith.constant 0 : index
    %c0_0 = arith.constant 0 : index
    %0 = vector.load %arg1[%c0, %c0_0] : memref<1x128xf32, #tpu.memory_space<vmem>>, vector<1x128xf32>
    %c0_1 = arith.constant 0 : index
    %c0_2 = arith.constant 0 : index
    %1 = vector.load %arg2[%c0_1, %c0_2] : memref<1x128xf32, #tpu.memory_space<vmem>>, vector<1x128xf32>
    tpu.vector_store %arg2[%c0_1, %c0_2], %0 {strides = array<i32>} : memref<1x128xf32, #tpu.memory_space<vmem>>, vector<1x128xf32>,
    return
  }
  func.func @transform_0(%arg0: i32) -> (i32, i32) {
    %c0_i32 = arith.constant 0 : i32
    %c0_i32_0 = arith.constant 0 : i32
    return %arg0, %c0_i32 : i32, i32
  }
  func.func @transform_1(%arg0: i32) -> (i32, i32) {
    %c0_i32 = arith.constant 0 : i32
    %c0_i32_0 = arith.constant 0 : i32
    return %arg0, %c0_i32 : i32, i32
  }
}

</mosaic_0001>

<bundles_post_ra>
// kernel: identity.1
= control target key start
LH: loop header
LB: loop body
LE: loop exit
PB: predicated region body
PF: predicated region fallthrough
CT: control target
= control target key end

     0   :  { %s30_s0 = inlined_call_operand.vmem [shape: f32[1,128], index: 0, kind: input, shape index: {}, may-alias: {0,1}]   ;;  %s31_s1 = inlined_call_operand.vmem [shape: f32[1,128], index: 1, kind: output, shape index: {}, may-alias: {0,1}]  }
   0x1   :  { %v8_v0 = vld [vmem:[%s30_s0] sm:$0x1] }
   0x2   :  { %9 = vst [vmem:[%s31_s1] sm:$0x1] %v8_v0 }

</bundles_post_ra>
